<compile_context>
chip_gen: v6e
topology: v6e:2x2x1
jax: 0.10.0
libtpu: 0.0.40
codegen_flags: <defaults>
</compile_context>

<pallas_src>
import jax
import jax.numpy as jnp
from jax.experimental import pallas as pl
from jax.experimental.pallas import tpu as pltpu

_SINGLE_BLOCK_MAX = 256          # below this a batch grid buys nothing
_VMEM_LIMIT_BYTES = 32 * 1024 * 1024   # safe on v5e/v6e/v7x


def _qnet_kernel(x_ref, w1_ref, b1_ref, w2_ref, b2_ref, o_ref):
    # Fused MLP hot path, all in VMEM:
    # bf16 matmul (f32 acc) -> f32 bias -> ReLU -> bf16 matmul (f32 acc) -> f32 bias.
    x = x_ref[...].astype(jnp.bfloat16)
    h = jnp.dot(x, w1_ref[...], preferred_element_type=jnp.float32)
    h = jnp.maximum(h + b1_ref[...], 0.0)                 # bias (1,H) broadcasts
    o = jnp.dot(h.astype(jnp.bfloat16), w2_ref[...],
                preferred_element_type=jnp.float32)
    o_ref[...] = (o + b2_ref[...]).astype(o_ref.dtype)


def qnet_forward(x, params, *, tile_b=2048):
    """x: (B, D_in) f32. params: (w1_t bf16 (D_in,H), b1 f32 (1,H),
                                  w2_t bf16 (H,O),   b2 f32 (1,O))."""
    w1_t, b1_r, w2_t, b2_r = params
    B, D_in = x.shape
    H = w1_t.shape[1]
    O = w2_t.shape[1]

    single_block_max = min(tile_b, _SINGLE_BLOCK_MAX)
    if B <= single_block_max:
        # Whole problem is one block; block_shape == array shape satisfies the
        # (8,128) rule regardless of B/D_in/O.
        tb, n_tiles = B, 1
    else:
        # Guarantee >= 2 tiles (v7x megacore) and keep tb a multiple of 8
        # (sublane rule) since it no longer equals the full batch dim.
        tb = min(tile_b, pl.cdiv(B, 2))
        tb = max(8, (tb // 8) * 8)
        n_tiles = pl.cdiv(B, tb)

    # No wrapper-side jnp.pad: Pallas masks the partial last block's writeback,
    # and the garbage tail rows never feed a cross-row reduction.
    flops = 2 * B * (D_in * H + H * O)
    bytes_accessed = (4 * B * (D_in + O)          # f32 activations in/out
                      + 2 * (D_in * H + H * O)    # bf16 weights
                      + 4 * (H + O))              # f32 biases

    return pl.pallas_call(
        _qnet_kernel,
        out_shape=jax.ShapeDtypeStruct((B, O), x.dtype),
        grid=(n_tiles,),
        in_specs=[
            pl.BlockSpec((tb, D_in), lambda i: (i, 0)),   # batch-tiled activations
            pl.BlockSpec((D_in, H), lambda i: (0, 0)),    # weights/biases: constant
            pl.BlockSpec((1, H), lambda i: (0, 0)),       # index_map => stay VMEM-
            pl.BlockSpec((H, O), lambda i: (0, 0)),       # resident across all
            pl.BlockSpec((1, O), lambda i: (0, 0)),       # batch tiles (no re-DMA)
        ],
        out_specs=pl.BlockSpec((tb, O), lambda i: (i, 0)),
        compiler_params=pltpu.CompilerParams(
            dimension_semantics=("parallel",),            # megacore split on v7x
            vmem_limit_bytes=_VMEM_LIMIT_BYTES),          # v5e default is 16 MiB
        cost_estimate=pl.CostEstimate(
            flops=flops, transcendentals=0, bytes_accessed=bytes_accessed),
    )(x, w1_t, b1_r, w2_t, b2_r)


def init_params(key, input_size, hidden_size, output_size, dtype=jnp.float32):
    """PyTorch nn.Linear-style init (uniform +/- 1/sqrt(fan_in)).  Kernel params
    are transposed to (in, out) and cast to bf16 ONCE here so the forward path
    emits no per-step transpose/reshape/cast HLOs and feeds the MXU bf16."""
    k1, k2, k3, k4 = jax.random.split(key, 4)
    bound1 = 1.0 / (input_size ** 0.5)
    bound2 = 1.0 / (hidden_size ** 0.5)
    w1 = jax.random.uniform(k1, (hidden_size, input_size), dtype, -bound1, bound1)
    b1 = jax.random.uniform(k2, (hidden_size,), dtype, -bound1, bound1)
    w2 = jax.random.uniform(k3, (output_size, hidden_size), dtype, -bound2, bound2)
    b2 = jax.random.uniform(k4, (output_size,), dtype, -bound2, bound2)
    torch_layout = (w1, b1, w2, b2)                       # (out, in) like nn.Linear
    kernel_params = (w1.T.astype(jnp.bfloat16), b1.reshape(1, -1),
                     w2.T.astype(jnp.bfloat16), b2.reshape(1, -1))
    return kernel_params, torch_layout


def _reference(x, torch_params):
    w1, b1, w2, b2 = torch_params
    return jnp.maximum(x @ w1.T + b1, 0.0) @ w2.T + b2


if __name__ == "__main__":
    INPUT, HIDDEN, OUTPUT = 11, 32, 3   # snake-game style Q-net, small hidden

    key = jax.random.PRNGKey(0)
    kx, kx2, kx3, kp = jax.random.split(key, 4)
    kernel_params, torch_params = init_params(kp, INPUT, HIDDEN, OUTPUT)

    # bf16 MXU operands with f32 accumulation -> loosened tolerances vs f32 ref.
    ATOL, RTOL = 5e-2, 5e-2

    # 1) Tiny batch: single full-array block path (overhead-bound regime).
    x_small = jax.random.normal(kx, (4, INPUT), jnp.float32)
    out_small = jax.block_until_ready(qnet_forward(x_small, kernel_params))
    assert out_small.shape == (4, OUTPUT)
    assert jnp.allclose(out_small, _reference(x_small, torch_params),
                        atol=ATOL, rtol=RTOL)

    # 2) Small tile to exercise the batch grid, VMEM-resident weights, and the
    #    partial last block without any wrapper-side pad (20 -> tiles of 8,8,4).
    x_big = jax.random.normal(kx2, (20, INPUT), jnp.float32)
    out_big = jax.block_until_ready(qnet_forward(x_big, kernel_params, tile_b=8))
    assert out_big.shape == (20, OUTPUT)
    assert jnp.allclose(out_big, _reference(x_big, torch_params),
                        atol=ATOL, rtol=RTOL)

    # 3) B > 256 with default tile_b: exercises the >=2-tile (megacore) split
    #    (tb = 144, tiles of 144,144,12) and the masked final writeback.
    x_mid = jax.random.normal(kx3, (300, INPUT), jnp.float32)
    out_mid = jax.block_until_ready(qnet_forward(x_mid, kernel_params))
    assert out_mid.shape == (300, OUTPUT)
    assert jnp.allclose(out_mid, _reference(x_mid, torch_params),
                        atol=ATOL, rtol=RTOL)

    print("KERNEL_OK")
</pallas_src>

<mosaic_0001>
module attributes {stable_mosaic.version = 11 : i64} {
  func.func @_qnet_kernel(%arg0: i32, %arg1: memref<4x11xf32, #tpu.memory_space<vmem>>, %arg2: memref<11x32xbf16, #tpu.memory_space<vmem>>, %arg3: memref<1x32xf32, #tpu.memory_space<vmem>>, %arg4: memref<32x3xbf16, #tpu.memory_space<vmem>>, %arg5: memref<1x3xf32, #tpu.memory_space<vmem>>, %arg6: memref<4x3xf32, #tpu.memory_space<vmem>>) attributes {dimension_semantics = [#tpu.dimension_semantics<parallel>], iteration_bounds = array<i64: 1>, scalar_prefetch = 0 : i64, scratch_operands = 0 : i64, tpu.core_type = #tpu.core_type<tc>, window_params = [{transform_indices = @transform_0, window_bounds = array<i64: 4, 11>}, {pipeline_mode = #tpu.pipeline_mode<synchronous>, transform_indices = @transform_1, window_bounds = array<i64: 11, 32>}, {pipeline_mode = #tpu.pipeline_mode<synchronous>, transform_indices = @transform_2, window_bounds = array<i64: 1, 32>}, {pipeline_mode = #tpu.pipeline_mode<synchronous>, transform_indices = @transform_3, window_bounds = array<i64: 32, 3>}, {pipeline_mode = #tpu.pipeline_mode<synchronous>, transform_indices = @transform_4, window_bounds = array<i64: 1, 3>}, {transform_indices = @transform_5, window_bounds = array<i64: 4, 3>}]} {
    %c0 = arith.constant 0 : index
    %c0_0 = arith.constant 0 : index
    %0 = vector.load %arg1[%c0, %c0_0] : memref<4x11xf32, #tpu.memory_space<vmem>>, vector<4x11xf32>
    %1 = arith.truncf %0 : vector<4x11xf32> to vector<4x11xbf16>
    %c0_1 = arith.constant 0 : index
    %c0_2 = arith.constant 0 : index
    %2 = vector.load %arg2[%c0_1, %c0_2] : memref<11x32xbf16, #tpu.memory_space<vmem>>, vector<11x32xbf16>
    %cst = arith.constant dense<0.000000e+00> : vector<4x32xf32>
    %3 = tpu.matmul %1, %2, %cst {dimension_numbers = #tpu.dot_dimension_numbers<[1], [0], [0], [1], [0, 0, 1, 1], [], []>} : vector<4x11xbf16>, vector<11x32xbf16>, vector<4x32xf32> -> vector<4x32xf32>
    %c0_3 = arith.constant 0 : index
    %c0_4 = arith.constant 0 : index
    %4 = vector.load %arg3[%c0_3, %c0_4] : memref<1x32xf32, #tpu.memory_space<vmem>>, vector<1x32xf32>
    %5 = vector.broadcast %4 : vector<1x32xf32> to vector<4x32xf32>
    %6 = arith.addf %3, %5 : vector<4x32xf32>
    %cst_5 = arith.constant 0.000000e+00 : f32
    %7 = vector.broadcast %cst_5 : f32 to vector<4x32xf32>
    %8 = arith.maximumf %6, %7 : vector<4x32xf32>
    %9 = arith.truncf %8 : vector<4x32xf32> to vector<4x32xbf16>
    %c0_6 = arith.constant 0 : index
    %c0_7 = arith.constant 0 : index
    %10 = vector.load %arg4[%c0_6, %c0_7] : memref<32x3xbf16, #tpu.memory_space<vmem>>, vector<32x3xbf16>
    %cst_8 = arith.constant dense<0.000000e+00> : vector<4x3xf32>
    %11 = tpu.matmul %9, %10, %cst_8 {dimension_numbers = #tpu.dot_dimension_numbers<[1], [0], [0], [1], [0, 0, 1, 1], [], []>} : vector<4x32xbf16>, vector<32x3xbf16>, vector<4x3xf32> -> vector<4x3xf32>
    %c0_9 = arith.constant 0 : index
    %c0_10 = arith.constant 0 : index
    %12 = vector.load %arg5[%c0_9, %c0_10] : memref<1x3xf32, #tpu.memory_space<vmem>>, vector<1x3xf32>
    %13 = vector.broadcast %12 : vector<1x3xf32> to vector<4x3xf32>
    %14 = arith.addf %11, %13 : vector<4x3xf32>
    %c0_11 = arith.constant 0 : index
    %c0_12 = arith.constant 0 : index
    %15 = vector.load %arg6[%c0_11, %c0_12] : memref<4x3xf32, #tpu.memory_space<vmem>>, vector<4x3xf32>
    tpu.vector_store %arg6[%c0_11, %c0_12], %14 {strides = array<i32>} : memref<4x3xf32, #tpu.memory_space<vmem>>, vector<4x3xf32>,
    return
  }
  func.func @transform_0(%arg0: i32) -> (i32, i32) {
    %c0_i32 = arith.constant 0 : i32
    %c0_i32_0 = arith.constant 0 : i32
    return %arg0, %c0_i32 : i32, i32
  }
  func.func @transform_1(%arg0: i32) -> (i32, i32) {
    %c0_i32 = arith.constant 0 : i32
    %c0_i32_0 = arith.constant 0 : i32
    %c0_i32_1 = arith.constant 0 : i32
    return %c0_i32, %c0_i32_0 : i32, i32
  }
  func.func @transform_2(%arg0: i32) -> (i32, i32) {
    %c0_i32 = arith.constant 0 : i32
    %c0_i32_0 = arith.constant 0 : i32
    %c0_i32_1 = arith.constant 0 : i32
    return %c0_i32, %c0_i32_0 : i32, i32
  }
  func.func @transform_3(%arg0: i32) -> (i32, i32) {
    %c0_i32 = arith.constant 0 : i32
    %c0_i32_0 = arith.constant 0 : i32
    %c0_i32_1 = arith.constant 0 : i32
    return %c0_i32, %c0_i32_0 : i32, i32
  }
  func.func @transform_4(%arg0: i32) -> (i32, i32) {
    %c0_i32 = arith.constant 0 : i32
    %c0_i32_0 = arith.constant 0 : i32
    %c0_i32_1 = arith.constant 0 : i32
    return %c0_i32, %c0_i32_0 : i32, i32
  }
  func.func @transform_5(%arg0: i32) -> (i32, i32) {
    %c0_i32 = arith.constant 0 : i32
    %c0_i32_0 = arith.constant 0 : i32
    return %arg0, %c0_i32 : i32, i32
  }
}

</mosaic_0001>

<bundles_post_ra>
// kernel: tpu_custom_call.1
= control target key start
LH: loop header
LB: loop body
LE: loop exit
PB: predicated region body
PF: predicated region fallthrough
CT: control target
= control target key end

     0   :  { %vm42_vm0 = vcmask 1044480   ;;  %v229_v0 = vmov 0.0   ;;  %vm43_vm1 = vcmask 1045504   ;;  %v230_v2 = vmov 65535   ;;  %s284_s0 = inlined_call_operand.vmem [shape: f32[4,11], index: 0, kind: input, shape index: {}]   ;;  %s285_s1 = inlined_call_operand.vmem [shape: bf16[11,32], index: 1, kind: input, shape index: {}]   ;;  %s286_s2 = inlined_call_operand.vmem [shape: f32[1,32], index: 2, kind: input, shape index: {}]   ;;  %s287_s3 = inlined_call_operand.vmem [shape: bf16[32,3], index: 3, kind: input, shape index: {}]   ;;  %s288_s4 = inlined_call_operand.vmem [shape: f32[1,3], index: 4, kind: input, shape index: {}]   ;;  %s289_s5 = inlined_call_operand.hbm [shape: f32[4,3], index: 5, kind: output, shape index: {}]  }
   0x1   :  { %186 = vmatprep.subr.bf16.mxu0 %v229_v0  ;;  %v204_v1 = vld [vmem:[%s285_s1] sm:$0x3f]   ;;  %192 = vmatprep.subr.bf16.mxu1 %v229_v0  ;;  %v44_v3 = vsel %vm42_vm0, 4294967295, %v230_v2  ;;  %vm231_vm2 = vmmov 0  }
   0x2   :  { %188 = vmatprep.mubr.msk.bf16.mxu0 %vm231_vm2, %v229_v0  ;;  %v22_v4 = vld [vmem:[%s284_s0] sm:$0xf]  ;;  %196 = vmatprep.mubr.msk.bf16.mxu1 %vm231_vm2, %v229_v0  ;;  %v45_v5 = vsel %vm43_vm1, %v44_v3, 0 }
   0x3   :  { %v47_v6 = vand.u32 %v204_v1, %v45_v5 }
   0x4   :  { %10 = vsyncpa [#allocation3], 0  ;;  %v23_v7 = vpack.c.bf16 %v22_v4, %v22_v4  ;;  %vm38_vm3 = vcmask 89088   ;;  %v205_v8 = vld [vmem:[%s287_s3 + $0x8] sm:$0xff]   ;;  %v206_v9 = vld [vmem:[%s287_s3] sm:$0xff]   ;;  %vm114_vm4 = vcmask 261120  }
   0x5   :  { %187 = vmatpush3.bf16.msra.mxu0 %v47_v6  ;;  %193 = vmatpush3.bf16.msra.mxu1 %v205_v8  ;;  %v174_v10 = vld [vmem:[%s286_s2] ss:$0 sm:$0xff]  ;;  %s232_s28 = smov [#allocation2]   ;;  %vm158_vm5 = vcmask 19456  }
   0x6   :  { %194 = vmatprep.subr.bf16.mxu1 %v229_v0  ;;  %v177_v18 = vld [vmem:[%s288_s4] ss:$0 sm:$0xff]  ;;  %s166_s3 = sshll.u32 %s232_s28, 4  ;;  %s167_s3 = int_to_ptr.vmem [resolvable:$true] %s166_s3 }
   0x7   :  { %s207_s2 = scalar_lea.vmem %s167_s3, 64  ;;  %p212_p1 = scmp.lt.s32.totalorder %s167_s3, %s167_s3 }
   0x8   :  { %189 = vmatmul.mubr.msk.bf16.vlgmr.msra.gmra.mxu0 %vm38_vm3, %v23_v7  ;;  %p208_p0 = scmp.ne.s32.totalorder %s167_s3, %s207_s2  ;;  %p213_p2 = scmp.lt.s32.totalorder %s207_s2, %s207_s2 }
   0x9   :  { %195 = vmatpush3.bf16.msra.mxu1 %v206_v9 }
   0xa   :  { %p214_p3 = por %p213_p2, %p212_p1 }
   0xc   :  { %p215_p4 = pnand %p214_p3, %p208_p0 }
  0xc8   :  { %v83_v11 = vpop.f32.mrf.mxu0 }
  0xc9   :  { %v84_v12 = vadd.f32 %v174_v10, %v83_v11 }
  0xca   :  { %v190_v13 = vpop.f32.mrf.mxu0 }
  0xcb   :  { %v89_v14 = vmax.f32 %v84_v12, 0.0 }
  0xcc   :  { %v86_v15 = vpop.f32.mrf.mxu0 }
  0xcd   :  { %v90_v16 = vpack.c.bf16 %v89_v14, %v89_v14 }
  0xce   :  { %v191_v17 = vpop.f32.mrf.mxu0 }
  0xcf   :  { %197 = vmatmul.mubr.msk.bf16.vlgmr.msra.gmra.mxu1 %vm114_vm4, %v90_v16 }
 0x18f   :  { %v152_v19 = vpop.f32.mrf.mxu1 }
 0x190   :  { %v153_v20 = vadd.f32 %v177_v18, %v152_v19 }
 0x191   :  { %v198_v21 = vpop.f32.mrf.mxu1 }
 0x192   :  { %159 = vst.msk [vmem:[#allocation2] sm:$0xf] %vm158_vm5, %v153_v20 }
 0x193   :  { %v155_v22 = vpop.f32.mrf.mxu1 }
 0x194   :  { %218 = shalt.err (!%p215_p4)
}
 0x195   :  { %169 = dma.vmem_to_hbm [thread:$0]  %s167_s3, 64, %s289_s5, [#allocation3]   ;;  %v199_v23 = vpop.f32.mrf.mxu1 }
 0x196   :  { %227 = dma.done.wait [#allocation3], 64  }
 0x197   :  { %228 = vsyncadd [#allocation3], 4294967232 }
 0x198   :  { %173 = vsyncpa [#allocation3], 1 }

</bundles_post_ra>
